<compile_context>
chip_gen: v7x
topology: tpu7x:2x2x1
jax: 0.10.0
libtpu: 0.0.40
codegen_flags: <defaults>
</compile_context>

<pallas_src>
import functools

import jax
import jax.numpy as jnp
from jax import lax
from jax.experimental import pallas as pl
from jax.experimental.pallas import tpu as pltpu


_LANES = 128
_TILE_ROWS = 1024                 # (1024, 128) f32 tile = 512 KiB per input per buffer
_SINGLE_BLOCK_MAX = 32 * 1024     # elements; at/below this use the one-shot kernel


def _mse_single_block_kernel(p_ref, j_ref, out_ref, *, n_valid):
    """Whole problem fits in one block: mean of squared differences."""
    d = p_ref[...].astype(jnp.float32) - j_ref[...].astype(jnp.float32)
    out_ref[0, 0] = jnp.sum(d * d) / jnp.float32(n_valid)


def _mse_tiled_kernel(p_ref, j_ref, out_ref, acc_ref, *,
                      n_rows, n_valid, tile_rows, mask_tail):
    step = pl.program_id(0)

    @pl.when(step == 0)
    def _():
        acc_ref[...] = jnp.zeros_like(acc_ref)

    d = p_ref[...].astype(jnp.float32) - j_ref[...].astype(jnp.float32)
    sq = d * d
    if mask_tail:
        # The last grid block is partial; rows past the array end hold unspecified
        # data.  Zero them before accumulating (2-D iota; 1-D iota unsupported on TPU).
        row_ids = step * tile_rows + lax.broadcasted_iota(jnp.int32, sq.shape, 0)
        sq = jnp.where(row_ids < n_rows, sq, 0.0)

    # Element-wise accumulation stays on the VPU and co-issues with the loads;
    # the cross-lane/sublane reduction through the XLU is paid exactly once below.
    acc_ref[...] += sq

    @pl.when(step == pl.num_programs(0) - 1)
    def _():
        out_ref[0, 0] = jnp.sum(acc_ref[...]) / jnp.float32(n_valid)


def mpjpe_loss(pred, joints, joint2d=None):
    """MSE(pred, joints) with 'mean' reduction, matching nn.MSELoss(). joint2d is ignored."""
    del joint2d  # unused by the reference forward pass
    assert pred.shape == joints.shape, "pred and joints must have identical shapes"

    n_valid = int(pred.size)
    p_flat = pred.reshape(-1)
    j_flat = joints.reshape(-1)

    # ---------- small / demo path: one block, no padding, no extra HBM traffic ----------
    if n_valid <= _SINGLE_BLOCK_MAX:
        p2d = p_flat.reshape(1, n_valid)
        j2d = j_flat.reshape(1, n_valid)
        kernel = functools.partial(_mse_single_block_kernel, n_valid=n_valid)
        out = pl.pallas_call(
            kernel,
            out_shape=jax.ShapeDtypeStruct((1, 1), jnp.float32),
            grid_spec=pltpu.PrefetchScalarGridSpec(
                num_scalar_prefetch=0,
                grid=(1,),
                in_specs=[
                    pl.BlockSpec((1, n_valid), lambda i: (0, 0)),
                    pl.BlockSpec((1, n_valid), lambda i: (0, 0)),
                ],
                out_specs=pl.BlockSpec((1, 1), lambda i: (0, 0),
                                       memory_space=pltpu.SMEM),
            ),
            compiler_params=pltpu.CompilerParams(
                dimension_semantics=("arbitrary",)),
        )(p2d, j2d)
        return out[0, 0]

    # ---------- large path: lane-dense (rows, 128) view, big tiles, VMEM accumulator ----------
    rem = n_valid % _LANES
    if rem != 0:
        # Only pad up to the next multiple of 128 lanes; padded zeros contribute 0 to the sum.
        # TODO(synk): jnp.pad still copies the whole array; avoidable only when numel % 128 == 0.
        pad = _LANES - rem
        p_flat = jnp.pad(p_flat, (0, pad))
        j_flat = jnp.pad(j_flat, (0, pad))

    n_rows = p_flat.size // _LANES
    p2d = p_flat.reshape(n_rows, _LANES)
    j2d = j_flat.reshape(n_rows, _LANES)

    # Tile rows: big (<=1024) and a multiple of 8, never larger than the array.
    tile_rows = max(8, min(_TILE_ROWS, (n_rows // 8) * 8))
    grid = (pl.cdiv(n_rows, tile_rows),)
    mask_tail = (n_rows % tile_rows) != 0

    kernel = functools.partial(
        _mse_tiled_kernel, n_rows=n_rows, n_valid=n_valid,
        tile_rows=tile_rows, mask_tail=mask_tail)

    out = pl.pallas_call(
        kernel,
        out_shape=jax.ShapeDtypeStruct((1, 1), jnp.float32),
        grid_spec=pltpu.PrefetchScalarGridSpec(
            num_scalar_prefetch=0,
            grid=grid,
            in_specs=[
                pl.BlockSpec((tile_rows, _LANES), lambda i: (i, 0)),
                pl.BlockSpec((tile_rows, _LANES), lambda i: (i, 0)),
            ],
            out_specs=pl.BlockSpec((1, 1), lambda i: (0, 0),
                                   memory_space=pltpu.SMEM),
            scratch_shapes=[pltpu.VMEM((tile_rows, _LANES), jnp.float32)],
        ),
        compiler_params=pltpu.CompilerParams(
            dimension_semantics=("arbitrary",)),  # reduction axis
        # TODO(synk): on v7x, split the reduction over the 2 TensorCores with a leading
        # "parallel" grid axis + per-core partial sums (gate on pltpu.get_tpu_info()).
    )(p2d, j2d)
    return out[0, 0]


if __name__ == "__main__":
    key = jax.random.PRNGKey(0)
    k1, k2, k3 = jax.random.split(key, 3)

    # Small pose-like shapes: batch=2, 16 joints, 3D coords (joint2d is 2D, unused).
    pred = jax.random.normal(k1, (2, 16, 3), dtype=jnp.float32)
    joints = jax.random.normal(k2, (2, 16, 3), dtype=jnp.float32)
    joint2d = jax.random.normal(k3, (2, 16, 2), dtype=jnp.float32)

    loss = mpjpe_loss(pred, joints, joint2d)
    jax.block_until_ready(loss)
    ref = jnp.mean((pred - joints) ** 2)
    assert jnp.allclose(loss, ref, rtol=1e-6, atol=1e-6), (loss, ref)

    # Also exercise the tiled path: 1024*48*3 = 147456 elems -> 1152 rows of 128 lanes,
    # two 1024-row grid steps with a masked partial last block, no padding copy.
    k4, k5 = jax.random.split(k3)
    big_pred = jax.random.normal(k4, (1024, 48, 3), dtype=jnp.float32)
    big_joints = jax.random.normal(k5, (1024, 48, 3), dtype=jnp.float32)
    big_loss = mpjpe_loss(big_pred, big_joints)
    jax.block_until_ready(big_loss)
    big_ref = jnp.mean((big_pred - big_joints) ** 2)
    assert jnp.allclose(big_loss, big_ref, rtol=1e-5, atol=1e-5), (big_loss, big_ref)

    print("KERNEL_OK")
</pallas_src>

<mosaic_0001>
module attributes {stable_mosaic.version = 11 : i64} {
  func.func @_mse_single_block_kernel(%arg0: i32, %arg1: memref<1x96xf32, #tpu.memory_space<vmem>>, %arg2: memref<1x96xf32, #tpu.memory_space<vmem>>, %arg3: memref<1x1xf32, #tpu.memory_space<smem>>) attributes {dimension_semantics = [#tpu.dimension_semantics<arbitrary>], iteration_bounds = array<i64: 1>, scalar_prefetch = 0 : i64, scratch_operands = 0 : i64, tpu.core_type = #tpu.core_type<tc>, window_params = [{pipeline_mode = #tpu.pipeline_mode<synchronous>, transform_indices = @transform_0, window_bounds = array<i64: 1, 96>}, {pipeline_mode = #tpu.pipeline_mode<synchronous>, transform_indices = @transform_1, window_bounds = array<i64: 1, 96>}, {transform_indices = @transform_2, window_bounds = array<i64: 1, 1>}]} {
    %c0 = arith.constant 0 : index
    %c0_0 = arith.constant 0 : index
    %0 = vector.load %arg1[%c0, %c0_0] : memref<1x96xf32, #tpu.memory_space<vmem>>, vector<1x96xf32>
    %c0_1 = arith.constant 0 : index
    %c0_2 = arith.constant 0 : index
    %1 = vector.load %arg2[%c0_1, %c0_2] : memref<1x96xf32, #tpu.memory_space<vmem>>, vector<1x96xf32>
    %2 = arith.subf %0, %1 : vector<1x96xf32>
    %3 = arith.mulf %2, %2 : vector<1x96xf32>
    %4 = vector.shape_cast %3 : vector<1x96xf32> to vector<1x1x96xf32>
    %cst = arith.constant dense<0.000000e+00> : vector<1xf32>
    %5 = vector.multi_reduction <add>, %4, %cst [1, 2] : vector<1x1x96xf32> to vector<1xf32>
    %6 = vector.shape_cast %5 : vector<1xf32> to vector<1x1x1xf32>
    %7 = vector.extract %6[0, 0, 0] : f32 from vector<1x1x1xf32>
    %cst_3 = arith.constant 9.600000e+01 : f32
    %8 = arith.divf %7, %cst_3 : f32
    %c0_4 = arith.constant 0 : index
    %c0_5 = arith.constant 0 : index
    %9 = memref.load %arg3[%c0_4, %c0_5] : memref<1x1xf32, #tpu.memory_space<smem>>
    memref.store %8, %arg3[%c0_4, %c0_5] : memref<1x1xf32, #tpu.memory_space<smem>>
    return
  }
  func.func @transform_0(%arg0: i32) -> (i32, i32) {
    %c0_i32 = arith.constant 0 : i32
    %c0_i32_0 = arith.constant 0 : i32
    %c0_i32_1 = arith.constant 0 : i32
    return %c0_i32, %c0_i32_0 : i32, i32
  }
  func.func @transform_1(%arg0: i32) -> (i32, i32) {
    %c0_i32 = arith.constant 0 : i32
    %c0_i32_0 = arith.constant 0 : i32
    %c0_i32_1 = arith.constant 0 : i32
    return %c0_i32, %c0_i32_0 : i32, i32
  }
  func.func @transform_2(%arg0: i32) -> (i32, i32) {
    %c0_i32 = arith.constant 0 : i32
    %c0_i32_0 = arith.constant 0 : i32
    %c0_i32_1 = arith.constant 0 : i32
    return %c0_i32, %c0_i32_0 : i32, i32
  }
}

</mosaic_0001>

<bundles_post_ra>
// kernel: tpu_custom_call.1
= control target key start
LH: loop header
LB: loop body
LE: loop exit
PB: predicated region body
PF: predicated region fallthrough
CT: control target
= control target key end

     0   :  { %7 = vsyncpa [#allocation3], 0  ;;  %s142_s0 = inlined_call_operand.hbm [shape: f32[1,96], index: 0, kind: input, shape index: {}]   ;;  %s143_s1 = inlined_call_operand.vmem [shape: f32[1,96], index: 1, kind: input, shape index: {}]   ;;  %s144_s2 = inlined_call_operand.hbm [shape: f32[1,1], index: 2, kind: output, shape index: {}]  }
   0x1   :  { %8 = vsyncpa [#allocation4], 0  ;;  %s98_s9 = smov [#allocation2]   ;;  %s62_s13 = scalar_lea.hbm %s142_s0, 16 }
   0x2   :  { %s15_s10 = sshll.u32 %s98_s9, 4  ;;  %p63_p0 = scmp.ne.s32.totalorder %s142_s0, %s62_s13  ;;  %s16_s10 = int_to_ptr.vmem [resolvable:$true] %s15_s10 }
   0x3   :  { %p66_p1 = scmp.lt.u32.totalorder %s62_s13, %s142_s0 }
   0x5   :  { %p68_p2 = pnand %p66_p1, %p63_p0 }
   0x7   :  { %71 = shalt.err (!%p68_p2)
}
   0x8   :  { %s72_s18 = scalar_lea.vmem %s16_s10, 16  ;;  %s76_s19 = scalar_lea.vmem %s16_s10, 32 }
   0x9   :  { %p73_p3 = scmp.ne.s32.totalorder %s16_s10, %s72_s18  ;;  %p77_p4 = scmp.lt.s32.totalorder %s16_s10, %s16_s10 }
   0xa   :  { %p78_p5 = scmp.lt.s32.totalorder %s76_s19, %s72_s18 }
   0xc   :  { %p79_p6 = por %p78_p5, %p77_p4 }
   0xe   :  { %p80_p7 = pnand %p79_p6, %p73_p3 }
  0x10   :  { %83 = shalt.err (!%p80_p7)
}
  0x11   :  { %18 = dma.hbm_to_vmem [thread:$0]  %s142_s0, 16, %s16_s10, [#allocation3]  }
  0x12   :  { %94 = dma.done.wait [#allocation3], 16  }
  0x13   :  { %95 = vsyncadd [#allocation3], 4294967280  ;;  %v24_v0 = vld [vmem:[#allocation2] sm:$0x1]  ;;  %vm28_vm0 = vcmask 778240  }
  0x14   :  { %v25_v1 = vld [vmem:[%s143_s1] sm:$0x1]  ;;  %s84_s1 = scalar_lea.hbm %s144_s2, 16 }
  0x15   :  { %v26_v2 = vsub.f32 %v24_v0, %v25_v1  ;;  %p85_p8 = scmp.ne.s32.totalorder %s144_s2, %s84_s1  ;;  %p88_p9 = scmp.lt.u32.totalorder %s84_s1, %s144_s2 }
  0x17   :  { %v27_v3 = vmul.f32 %v26_v2, %v26_v2  ;;  %p90_p10 = pnand %p88_p9, %p85_p8 }
  0x19   :  { %v29_v4 = vsel %vm28_vm0, %v27_v3, 0.0 }
  0x1a   :  { %30 = vadd.xlane.f32.xlu0 %v29_v4 }
  0xa7   :  { %v31_v5 = vpop.xlane.xlu0 %30 }
  0xa8   :  { %v32_v6 = vrot.slane %v31_v5, 4 }
  0xaa   :  { %v33_v7 = vadd.f32 %v32_v6, %v31_v5 }
  0xac   :  { %v34_v8 = vrot.slane %v33_v7, 2 }
  0xae   :  { %v35_v9 = vadd.f32 %v34_v8, %v33_v7 }
  0xb0   :  { %v36_v10 = vrot.slane %v35_v9, 1 }
  0xb2   :  { %v37_v11 = vadd.f32 %v36_v10, %v35_v9 }
  0xb4   :  { %58 = vpush %v37_v11 }
  0xe5   :  { %s59_s0 = spop %58 }
  0xe6   :  { %s41_s24 = smul.f32 0.010416667, %s59_s0 }
  0xe8   :  { %43 = sst [smem:[#allocation5]] %s41_s24 }
  0xe9   :  { %93 = shalt.err (!%p90_p10)
}
  0xea   :  { %s99_s3 = smov [#allocation5]  }
  0xeb   :  { %51 = dma.smem_to_hbm %s99_s3, 16, %s144_s2, [#allocation4]  }
  0xec   :  { %96 = dma.done.wait [#allocation4], 16  }
  0xed   :  { %97 = vsyncadd [#allocation4], 4294967280 }
  0xee   :  { %55 = sfence }
  0xef   :  { %56 = vsyncpa [#allocation3], 1 }
  0xf0   :  { %57 = vsyncpa [#allocation4], 1 }

</bundles_post_ra>
